<compile_context>
chip_gen: v7x
topology: tpu7x:2x2x1
jax: 0.10.0
libtpu: 0.0.40
codegen_flags: <defaults>
</compile_context>

<pallas_src>
import functools

import jax
import jax.numpy as jnp
from jax.experimental import pallas as pl
from jax.experimental.pallas import tpu as pltpu

HALF_LOG_2PI = 0.9189385332046727  # 0.5 * log(2*pi)


def _softplus(x):
    # numerically stable softplus (f32 element-wise)
    return jnp.maximum(x, 0.0) + jnp.log1p(jnp.exp(-jnp.abs(x)))


def actor_kernel(x_ref, w1_ref, b1_ref, w2_ref, b2_ref, wh_ref, bh_ref,
                 eps_ref, out_ref, *, action_dim):
    A = action_dim
    x = x_ref[...]                                   # (TB, S) f32

    # fc1 + relu : bf16 MXU operands, f32 accumulate, f32 element-wise
    h1 = jnp.dot(x.astype(jnp.bfloat16), w1_ref[...],
                 preferred_element_type=jnp.float32) + b1_ref[...]
    h1 = jnp.maximum(h1, 0.0)

    # fc2 + relu
    h2 = jnp.dot(h1.astype(jnp.bfloat16), w2_ref[...],
                 preferred_element_type=jnp.float32) + b2_ref[...]
    h2 = jnp.maximum(h2, 0.0)

    # fused heads: one (TB, 2A) matmul; lanes 0:A = mean head, A:2A = std head
    heads = jnp.dot(h2.astype(jnp.bfloat16), wh_ref[...],
                    preferred_element_type=jnp.float32) + bh_ref[...]

    mean = jnp.tanh(heads[:, :A]) * 2.0
    std = _softplus(heads[:, A:]) + 0.001

    # reparameterized sample from Normal(mean, std), clamp to [-2, 2]
    action = jnp.clip(mean + std * eps_ref[...], -2.0, 2.0)

    # Normal(mean, std).log_prob(clamped action)
    inv_std = pl.reciprocal(std, approx=True)        # EUP vrcp, off the VALU path
    z = (action - mean) * inv_std
    logp = -0.5 * z * z - jnp.log(std) - HALF_LOG_2PI

    # single lane-dense output slab: [action | logp]
    out_ref[...] = jnp.concatenate([action, logp], axis=-1)


def actor_forward(x, params, eps, *, block_b=256):
    """x: (B, state_dim) f32, eps: (B, action_dim) standard-normal noise.

    Returns (action, action_log_prob), each (B, action_dim) f32.
    """
    B, S = x.shape
    H = params["w1"].shape[1]
    A = params["wm"].shape[1]

    # --- host-side weight packing / dtype prep ---
    # Fuse the two head projections into one matmul.
    wh = jnp.concatenate([params["wm"], params["ws"]], axis=1)    # (H, 2A)
    bh = jnp.concatenate([params["bm"], params["bs"]], axis=1)    # (1, 2A)
    # bf16 weights: MXU-native on v6e/v7x, halves weight DMA; f32 accumulation in-kernel.
    w1 = params["w1"].astype(jnp.bfloat16)
    w2 = params["w2"].astype(jnp.bfloat16)
    wh = wh.astype(jnp.bfloat16)
    b1, b2 = params["b1"], params["b2"]

    # --- batch tiling: block multiple of 8, pad batch if necessary ---
    TB = max(8, min(block_b, ((B + 7) // 8) * 8))
    Bp = ((B + TB - 1) // TB) * TB
    if Bp != B:
        pad = Bp - B
        x = jnp.pad(x, ((0, pad), (0, 0)))
        eps = jnp.pad(eps, ((0, pad), (0, 0)))
    nb = Bp // TB

    kernel = functools.partial(actor_kernel, action_dim=A)

    cost = pl.CostEstimate(
        flops=2 * Bp * (S * H + H * H + H * 2 * A) + 12 * Bp * A,
        transcendentals=5 * Bp * A,
        bytes_accessed=(x.size + eps.size) * 4
        + (w1.size + w2.size + wh.size) * 2
        + (b1.size + b2.size + bh.size) * 4
        + Bp * 2 * A * 4,
    )

    out = pl.pallas_call(
        kernel,
        out_shape=jax.ShapeDtypeStruct((Bp, 2 * A), jnp.float32),
        grid_spec=pltpu.PrefetchScalarGridSpec(
            num_scalar_prefetch=0,
            grid=(nb,),
            in_specs=[
                pl.BlockSpec((TB, S), lambda i: (i, 0)),       # x      (batch-blocked)
                pl.BlockSpec((S, H), lambda i: (0, 0)),        # w1     (VMEM-resident)
                pl.BlockSpec((1, H), lambda i: (0, 0)),        # b1
                pl.BlockSpec((H, H), lambda i: (0, 0)),        # w2
                pl.BlockSpec((1, H), lambda i: (0, 0)),        # b2
                pl.BlockSpec((H, 2 * A), lambda i: (0, 0)),    # packed head weights
                pl.BlockSpec((1, 2 * A), lambda i: (0, 0)),    # packed head bias
                pl.BlockSpec((TB, A), lambda i: (i, 0)),       # eps    (batch-blocked)
            ],
            out_specs=pl.BlockSpec((TB, 2 * A), lambda i: (i, 0)),
        ),
        compiler_params=pltpu.CompilerParams(
            dimension_semantics=("parallel",)),                # megacore on v7x
        cost_estimate=cost,
    )(x, w1, b1, w2, b2, wh, bh, eps)

    action = out[:B, :A]
    logp = out[:B, A:]
    return action, logp


def actor_reference(x, params, eps):
    """Pure-JAX reference mirroring the kernel's numerics (bf16 matmul operands)."""
    def mm(a, w):
        return jnp.dot(a.astype(jnp.bfloat16), w.astype(jnp.bfloat16),
                       preferred_element_type=jnp.float32)

    h1 = jnp.maximum(mm(x, params["w1"]) + params["b1"], 0.0)
    h2 = jnp.maximum(mm(h1, params["w2"]) + params["b2"], 0.0)
    mean = jnp.tanh(mm(h2, params["wm"]) + params["bm"]) * 2.0
    std = _softplus(mm(h2, params["ws"]) + params["bs"]) + 0.001
    action = jnp.clip(mean + std * eps, -2.0, 2.0)
    z = (action - mean) / std
    logp = -0.5 * z * z - jnp.log(std) - HALF_LOG_2PI
    return action, logp


def init_params(key, state_dim, action_dim, hidden_dim=64):
    """Deterministic init mimicking torch.nn.Linear default (uniform +-1/sqrt(fan_in))."""
    def linear(k, fan_in, fan_out):
        kw, kb = jax.random.split(k)
        bound = 1.0 / jnp.sqrt(fan_in)
        w = jax.random.uniform(kw, (fan_in, fan_out), jnp.float32, -bound, bound)
        b = jax.random.uniform(kb, (1, fan_out), jnp.float32, -bound, bound)
        return w, b

    k1, k2, k3, k4 = jax.random.split(key, 4)
    w1, b1 = linear(k1, state_dim, hidden_dim)
    w2, b2 = linear(k2, hidden_dim, hidden_dim)
    wm, bm = linear(k3, hidden_dim, action_dim)
    ws, bs = linear(k4, hidden_dim, action_dim)
    return dict(w1=w1, b1=b1, w2=w2, b2=b2, wm=wm, bm=bm, ws=ws, bs=bs)


if __name__ == "__main__":
    B, STATE_DIM, ACTION_DIM, HIDDEN = 8, 16, 4, 64

    key = jax.random.PRNGKey(0)
    k_params, k_x, k_eps = jax.random.split(key, 3)

    params = init_params(k_params, STATE_DIM, ACTION_DIM, HIDDEN)
    x = jax.random.normal(k_x, (B, STATE_DIM), jnp.float32)
    # TODO(synk): torch Normal.sample() RNG stream is not reproduced; standard-normal
    # noise is supplied from the host (reparameterized sampling).
    eps = jax.random.normal(k_eps, (B, ACTION_DIM), jnp.float32)

    action, logp = actor_forward(x, params, eps)
    jax.block_until_ready((action, logp))

    assert action.shape == (B, ACTION_DIM) and logp.shape == (B, ACTION_DIM)
    assert bool(jnp.all(action >= -2.0)) and bool(jnp.all(action <= 2.0))
    assert bool(jnp.all(jnp.isfinite(logp)))

    # Correctness vs a matching-numerics pure-JAX reference.
    ref_action, ref_logp = actor_reference(x, params, eps)
    assert bool(jnp.allclose(action, ref_action, atol=1e-2, rtol=1e-2))
    assert bool(jnp.allclose(logp, ref_logp, atol=1e-2, rtol=1e-2))

    print("KERNEL_OK")
</pallas_src>

<mosaic_0001>
module attributes {stable_mosaic.version = 11 : i64} {
  func.func @actor_kernel(%arg0: i32, %arg1: memref<8x16xf32, #tpu.memory_space<vmem>>, %arg2: memref<16x64xbf16, #tpu.memory_space<vmem>>, %arg3: memref<1x64xf32, #tpu.memory_space<vmem>>, %arg4: memref<64x64xbf16, #tpu.memory_space<vmem>>, %arg5: memref<1x64xf32, #tpu.memory_space<vmem>>, %arg6: memref<64x8xbf16, #tpu.memory_space<vmem>>, %arg7: memref<1x8xf32, #tpu.memory_space<vmem>>, %arg8: memref<8x4xf32, #tpu.memory_space<vmem>>, %arg9: memref<8x8xf32, #tpu.memory_space<vmem>>) attributes {dimension_semantics = [#tpu.dimension_semantics<parallel>], iteration_bounds = array<i64: 1>, scalar_prefetch = 0 : i64, scratch_operands = 0 : i64, tpu.core_type = #tpu.core_type<tc>, window_params = [{transform_indices = @transform_0, window_bounds = array<i64: 8, 16>}, {pipeline_mode = #tpu.pipeline_mode<synchronous>, transform_indices = @transform_1, window_bounds = array<i64: 16, 64>}, {pipeline_mode = #tpu.pipeline_mode<synchronous>, transform_indices = @transform_2, window_bounds = array<i64: 1, 64>}, {pipeline_mode = #tpu.pipeline_mode<synchronous>, transform_indices = @transform_3, window_bounds = array<i64: 64, 64>}, {pipeline_mode = #tpu.pipeline_mode<synchronous>, transform_indices = @transform_4, window_bounds = array<i64: 1, 64>}, {pipeline_mode = #tpu.pipeline_mode<synchronous>, transform_indices = @transform_5, window_bounds = array<i64: 64, 8>}, {pipeline_mode = #tpu.pipeline_mode<synchronous>, transform_indices = @transform_6, window_bounds = array<i64: 1, 8>}, {transform_indices = @transform_7, window_bounds = array<i64: 8, 4>}, {transform_indices = @transform_8, window_bounds = array<i64: 8, 8>}]} {
    %c0 = arith.constant 0 : index
    %c0_0 = arith.constant 0 : index
    %0 = vector.load %arg1[%c0, %c0_0] : memref<8x16xf32, #tpu.memory_space<vmem>>, vector<8x16xf32>
    %1 = arith.truncf %0 : vector<8x16xf32> to vector<8x16xbf16>
    %c0_1 = arith.constant 0 : index
    %c0_2 = arith.constant 0 : index
    %2 = vector.load %arg2[%c0_1, %c0_2] : memref<16x64xbf16, #tpu.memory_space<vmem>>, vector<16x64xbf16>
    %cst = arith.constant dense<0.000000e+00> : vector<8x64xf32>
    %3 = tpu.matmul %1, %2, %cst {dimension_numbers = #tpu.dot_dimension_numbers<[1], [0], [0], [1], [0, 0, 1, 1], [], []>} : vector<8x16xbf16>, vector<16x64xbf16>, vector<8x64xf32> -> vector<8x64xf32>
    %c0_3 = arith.constant 0 : index
    %c0_4 = arith.constant 0 : index
    %4 = vector.load %arg3[%c0_3, %c0_4] : memref<1x64xf32, #tpu.memory_space<vmem>>, vector<1x64xf32>
    %5 = vector.broadcast %4 : vector<1x64xf32> to vector<8x64xf32>
    %6 = arith.addf %3, %5 : vector<8x64xf32>
    %cst_5 = arith.constant 0.000000e+00 : f32
    %7 = vector.broadcast %cst_5 : f32 to vector<8x64xf32>
    %8 = arith.maximumf %6, %7 : vector<8x64xf32>
    %9 = arith.truncf %8 : vector<8x64xf32> to vector<8x64xbf16>
    %c0_6 = arith.constant 0 : index
    %c0_7 = arith.constant 0 : index
    %10 = vector.load %arg4[%c0_6, %c0_7] : memref<64x64xbf16, #tpu.memory_space<vmem>>, vector<64x64xbf16>
    %cst_8 = arith.constant dense<0.000000e+00> : vector<8x64xf32>
    %11 = tpu.matmul %9, %10, %cst_8 {dimension_numbers = #tpu.dot_dimension_numbers<[1], [0], [0], [1], [0, 0, 1, 1], [], []>} : vector<8x64xbf16>, vector<64x64xbf16>, vector<8x64xf32> -> vector<8x64xf32>
    %c0_9 = arith.constant 0 : index
    %c0_10 = arith.constant 0 : index
    %12 = vector.load %arg5[%c0_9, %c0_10] : memref<1x64xf32, #tpu.memory_space<vmem>>, vector<1x64xf32>
    %13 = vector.broadcast %12 : vector<1x64xf32> to vector<8x64xf32>
    %14 = arith.addf %11, %13 : vector<8x64xf32>
    %cst_11 = arith.constant 0.000000e+00 : f32
    %15 = vector.broadcast %cst_11 : f32 to vector<8x64xf32>
    %16 = arith.maximumf %14, %15 : vector<8x64xf32>
    %17 = arith.truncf %16 : vector<8x64xf32> to vector<8x64xbf16>
    %c0_12 = arith.constant 0 : index
    %c0_13 = arith.constant 0 : index
    %18 = vector.load %arg6[%c0_12, %c0_13] : memref<64x8xbf16, #tpu.memory_space<vmem>>, vector<64x8xbf16>
    %cst_14 = arith.constant dense<0.000000e+00> : vector<8x8xf32>
    %19 = tpu.matmul %17, %18, %cst_14 {dimension_numbers = #tpu.dot_dimension_numbers<[1], [0], [0], [1], [0, 0, 1, 1], [], []>} : vector<8x64xbf16>, vector<64x8xbf16>, vector<8x8xf32> -> vector<8x8xf32>
    %c0_15 = arith.constant 0 : index
    %c0_16 = arith.constant 0 : index
    %20 = vector.load %arg7[%c0_15, %c0_16] : memref<1x8xf32, #tpu.memory_space<vmem>>, vector<1x8xf32>
    %21 = vector.broadcast %20 : vector<1x8xf32> to vector<8x8xf32>
    %22 = arith.addf %19, %21 : vector<8x8xf32>
    %23 = vector.extract_strided_slice %22 {offsets = [0, 0], sizes = [8, 4], strides = [1, 1]} : vector<8x8xf32> to vector<8x4xf32>
    %24 = math.tanh %23 : vector<8x4xf32>
    %cst_17 = arith.constant 2.000000e+00 : f32
    %25 = vector.broadcast %cst_17 : f32 to vector<8x4xf32>
    %26 = arith.mulf %24, %25 : vector<8x4xf32>
    %27 = vector.extract_strided_slice %22 {offsets = [0, 4], sizes = [8, 4], strides = [1, 1]} : vector<8x8xf32> to vector<8x4xf32>
    %cst_18 = arith.constant 0.000000e+00 : f32
    %28 = vector.broadcast %cst_18 : f32 to vector<8x4xf32>
    %29 = arith.maximumf %27, %28 : vector<8x4xf32>
    %30 = math.absf %27 : vector<8x4xf32>
    %cst_19 = arith.constant 0.000000e+00 : f32
    %31 = vector.broadcast %cst_19 : f32 to vector<8x4xf32>
    %32 = arith.subf %31, %30 : vector<8x4xf32>
    %33 = math.exp %32 : vector<8x4xf32>
    %34 = math.log1p %33 : vector<8x4xf32>
    %35 = arith.addf %29, %34 : vector<8x4xf32>
    %cst_20 = arith.constant 1.000000e-03 : f32
    %36 = vector.broadcast %cst_20 : f32 to vector<8x4xf32>
    %37 = arith.addf %35, %36 : vector<8x4xf32>
    %c0_21 = arith.constant 0 : index
    %c0_22 = arith.constant 0 : index
    %38 = vector.load %arg8[%c0_21, %c0_22] : memref<8x4xf32, #tpu.memory_space<vmem>>, vector<8x4xf32>
    %39 = arith.mulf %37, %38 : vector<8x4xf32>
    %40 = arith.addf %26, %39 : vector<8x4xf32>
    %cst_23 = arith.constant -2.000000e+00 : f32
    %cst_24 = arith.constant 2.000000e+00 : f32
    %41 = vector.broadcast %cst_23 : f32 to vector<8x4xf32>
    %42 = arith.maximumf %41, %40 : vector<8x4xf32>
    %43 = vector.broadcast %cst_24 : f32 to vector<8x4xf32>
    %44 = arith.minimumf %43, %42 : vector<8x4xf32>
    %45 = tpu.reciprocal %37 {approx = true} : vector<8x4xf32> -> vector<8x4xf32>
    %46 = arith.subf %44, %26 : vector<8x4xf32>
    %47 = arith.mulf %46, %45 : vector<8x4xf32>
    %cst_25 = arith.constant -5.000000e-01 : f32
    %48 = vector.broadcast %cst_25 : f32 to vector<8x4xf32>
    %49 = arith.mulf %48, %47 : vector<8x4xf32>
    %50 = arith.mulf %49, %47 : vector<8x4xf32>
    %51 = math.log %37 : vector<8x4xf32>
    %52 = arith.subf %50, %51 : vector<8x4xf32>
    %cst_26 = arith.constant 0.918938517 : f32
    %53 = vector.broadcast %cst_26 : f32 to vector<8x4xf32>
    %54 = arith.subf %52, %53 : vector<8x4xf32>
    %55 = tpu.concatenate %44, %54 in 1 : vector<8x4xf32>, vector<8x4xf32> -> vector<8x8xf32>
    %c0_27 = arith.constant 0 : index
    %c0_28 = arith.constant 0 : index
    %56 = vector.load %arg9[%c0_27, %c0_28] : memref<8x8xf32, #tpu.memory_space<vmem>>, vector<8x8xf32>
    tpu.vector_store %arg9[%c0_27, %c0_28], %55 {strides = array<i32>} : memref<8x8xf32, #tpu.memory_space<vmem>>, vector<8x8xf32>,
    return
  }
  func.func @transform_0(%arg0: i32) -> (i32, i32) {
    %c0_i32 = arith.constant 0 : i32
    %c0_i32_0 = arith.constant 0 : i32
    return %arg0, %c0_i32 : i32, i32
  }
  func.func @transform_1(%arg0: i32) -> (i32, i32) {
    %c0_i32 = arith.constant 0 : i32
    %c0_i32_0 = arith.constant 0 : i32
    %c0_i32_1 = arith.constant 0 : i32
    return %c0_i32, %c0_i32_0 : i32, i32
  }
  func.func @transform_2(%arg0: i32) -> (i32, i32) {
    %c0_i32 = arith.constant 0 : i32
    %c0_i32_0 = arith.constant 0 : i32
    %c0_i32_1 = arith.constant 0 : i32
    return %c0_i32, %c0_i32_0 : i32, i32
  }
  func.func @transform_3(%arg0: i32) -> (i32, i32) {
    %c0_i32 = arith.constant 0 : i32
    %c0_i32_0 = arith.constant 0 : i32
    %c0_i32_1 = arith.constant 0 : i32
    return %c0_i32, %c0_i32_0 : i32, i32
  }
  func.func @transform_4(%arg0: i32) -> (i32, i32) {
    %c0_i32 = arith.constant 0 : i32
    %c0_i32_0 = arith.constant 0 : i32
    %c0_i32_1 = arith.constant 0 : i32
    return %c0_i32, %c0_i32_0 : i32, i32
  }
  func.func @transform_5(%arg0: i32) -> (i32, i32) {
    %c0_i32 = arith.constant 0 : i32
    %c0_i32_0 = arith.constant 0 : i32
    %c0_i32_1 = arith.constant 0 : i32
    return %c0_i32, %c0_i32_0 : i32, i32
  }
  func.func @transform_6(%arg0: i32) -> (i32, i32) {
    %c0_i32 = arith.constant 0 : i32
    %c0_i32_0 = arith.constant 0 : i32
    %c0_i32_1 = arith.constant 0 : i32
    return %c0_i32, %c0_i32_0 : i32, i32
  }
  func.func @transform_7(%arg0: i32) -> (i32, i32) {
    %c0_i32 = arith.constant 0 : i32
    %c0_i32_0 = arith.constant 0 : i32
    return %arg0, %c0_i32 : i32, i32
  }
  func.func @transform_8(%arg0: i32) -> (i32, i32) {
    %c0_i32 = arith.constant 0 : i32
    %c0_i32_0 = arith.constant 0 : i32
    return %arg0, %c0_i32 : i32, i32
  }
}

</mosaic_0001>

<bundles_post_ra>
// kernel: tpu_custom_call.1
= control target key start
LH: loop header
LB: loop body
LE: loop exit
PB: predicated region body
PF: predicated region fallthrough
CT: control target
= control target key end

     0   :  { %v438_v1 = vmov 0.0   ;;  %vm48_vm0 = vcmask 130048   ;;  %vm439_vm1 = vmmov 0   ;;  %s546_s0 = inlined_call_operand.vmem [shape: f32[8,16], index: 0, kind: input, shape index: {}]   ;;  %s547_s1 = inlined_call_operand.vmem [shape: bf16[16,64], index: 1, kind: input, shape index: {}]   ;;  %s548_s2 = inlined_call_operand.vmem [shape: f32[1,64], index: 2, kind: input, shape index: {}]   ;;  %s549_s3 = inlined_call_operand.vmem [shape: bf16[64,64], index: 3, kind: input, shape index: {}]   ;;  %s550_s4 = inlined_call_operand.vmem [shape: f32[1,64], index: 4, kind: input, shape index: {}]   ;;  %s551_s5 = inlined_call_operand.vmem [shape: bf16[64,8], index: 5, kind: input, shape index: {}]   ;;  %s552_s6 = inlined_call_operand.vmem [shape: f32[1,8], index: 6, kind: input, shape index: {}]   ;;  %s553_s7 = inlined_call_operand.vmem [shape: f32[8,4], index: 7, kind: input, shape index: {}]   ;;  %s554_s8 = inlined_call_operand.hbm [shape: f32[8,8], index: 8, kind: output, shape index: {}]  }
   0x1   :  { %v395_v0 = vld [vmem:[%s547_s1] sm:$0xff]   ;;  %360 = vmatprep.subr.bf16.mxu0 %v438_v1  ;;  %366 = vmatprep.subr.bf16.mxu1 %v438_v1  ;;  %v397_v5 = vld [vmem:[%s549_s3 + $0x8] sm:$0xff]  }
   0x2   :  { %v31_v2 = vld [vmem:[%s546_s0] sm:$0xff]  ;;  %361 = vmatpush3.bf16.msra.mxu0 %v395_v0  ;;  %362 = vmatprep.mubr.msk.bf16.mxu0 %vm439_vm1, %v438_v1 }
   0x3   :  { %v396_v3 = vld [vmem:[%s549_s3] sm:$0xff]   ;;  %v32_v4 = vpack.c.bf16 %v31_v2, %v31_v2  ;;  %374 = vmatprep.mubr.msk.bf16.mxu1 %vm439_vm1, %v438_v1  ;;  %378 = vmatprep.subr.bf16.mxu0 %v438_v1 }
   0x4   :  { %367 = vmatpush3.bf16.msra.mxu1 %v396_v3 }
   0x5   :  { %368 = vmatprep.subr.bf16.mxu1 %v438_v1  ;;  %363 = vmatmul.mubr.msk.bf16.vlgmr.msra.gmra.mrb[0].mxu0 %vm48_vm0, %v32_v4 }
   0x6   :  { %386 = vmatprep.mubr.msk.bf16.mxu0 %vm439_vm1, %v438_v1 }
   0x8   :  { %369 = vmatpush3.bf16.msra.mxu1 %v397_v5 }
   0x9   :  { %13 = vsyncpa [#allocation3], 0  ;;  %370 = vmatprep.subr.bf16.mxu1 %v438_v1  ;;  %v398_v6 = vld [vmem:[%s549_s3 + $0x10] sm:$0xff]   ;;  %v399_v7 = vld [vmem:[%s549_s3 + $0x18] sm:$0xff]   ;;  %vm133_vm2 = vcmask 523264   ;;  %s440_s25 = smov 4  }
   0xa   :  { %v400_v8 = vld [vmem:[%s551_s5] sm:$0xff]   ;;  %v401_v9 = vld [vmem:[%s551_s5 + $0x8] sm:$0xff]   ;;  %v402_v18 = vld [vmem:[%s551_s5 + $0x10] sm:$0xff]   ;;  %vm313_vm4 = vcmask 31744   ;;  %vm315_vm5 = vcmask 64512  }
   0xb   :  { %379 = vmatpush3.bf16.msra.mxu0 %v400_v8  ;;  %v331_v10 = vld [vmem:[%s548_s2] ss:$0 sm:$0xff]  ;;  %v403_v19 = vld [vmem:[%s551_s5 + $0x18] sm:$0xff]  }
   0xc   :  { %371 = vmatpush3.bf16.msra.mxu1 %v398_v6  ;;  %380 = vmatprep.subr.bf16.mxu0 %v438_v1  ;;  %v279_v20 = vld [vmem:[%s553_s7] sm:$0xff] }
   0xd   :  { %372 = vmatprep.subr.bf16.mxu1 %v438_v1  ;;  %281 = vrot.lane.b32.xlu0 %v279_v20, %s440_s25  ;;  %v334_v21 = vld [vmem:[%s550_s4] ss:$0 sm:$0xff]  ;;  %s441_s4 = smov 124  }
   0xe   :  { %v340_v29 = vld [vmem:[%s552_s6] ss:$0 sm:$0xff]  ;;  %s442_s6 = smov [#allocation2]  }
   0xf   :  { %381 = vmatpush3.bf16.msra.mxu0 %v401_v9  ;;  %s323_s7 = sshll.u32 %s442_s6, 4  ;;  %s324_s7 = int_to_ptr.vmem [resolvable:$true] %s323_s7 }
  0x10   :  { %373 = vmatpush3.bf16.msra.mxu1 %v399_v7  ;;  %382 = vmatprep.subr.bf16.mxu0 %v438_v1  ;;  %s414_s29 = scalar_lea.vmem %s324_s7, 128  ;;  %p419_p1 = scmp.lt.s32.totalorder %s324_s7, %s324_s7 }
  0x11   :  { %p415_p0 = scmp.ne.s32.totalorder %s324_s7, %s414_s29  ;;  %p420_p2 = scmp.lt.s32.totalorder %s414_s29, %s414_s29 }
  0x13   :  { %383 = vmatpush3.bf16.msra.mxu0 %v402_v18  ;;  %p421_p3 = por %p420_p2, %p419_p1 }
  0x14   :  { %384 = vmatprep.subr.bf16.mxu0 %v438_v1 }
  0x15   :  { %p422_p4 = pnand %p421_p3, %p415_p0 }
  0x17   :  { %385 = vmatpush3.bf16.msra.mxu0 %v403_v19 }
  0x7f   :  { %v282_v49 = vpop.permute.xlu0 %281 }
  0xd8   :  { %v86_v11 = vpop.f32.mrb[0].mxu0 }
  0xd9   :  { %v87_v12 = vadd.f32 %v331_v10, %v86_v11  ;;  %v364_v13 = vpop.f32.mrb[1].mxu0 }
  0xda   :  { %v89_v14 = vpop.f32.mrb[2].mxu0 }
  0xdb   :  { %v92_v15 = vmax.f32 %v87_v12, 0.0  ;;  %v365_v16 = vpop.f32.mrb[3].mxu0 }
  0xdd   :  { %v93_v17 = vpack.c.bf16 %v92_v15, %v92_v15 }
  0xdf   :  { %375 = vmatmul.mubr.msk.bf16.vlgmr.msra.gmra.mrb[0].mxu1 %vm133_vm2, %v93_v17 }
 0x1b2   :  { %v171_v22 = vpop.f32.mrb[0].mxu1 }
 0x1b3   :  { %v172_v23 = vadd.f32 %v334_v21, %v171_v22  ;;  %v376_v24 = vpop.f32.mrb[1].mxu1 }
 0x1b4   :  { %v174_v25 = vpop.f32.mrb[2].mxu1 }
 0x1b5   :  { %v177_v26 = vmax.f32 %v172_v23, 0.0  ;;  %v377_v27 = vpop.f32.mrb[3].mxu1 }
 0x1b7   :  { %v178_v28 = vpack.c.bf16 %v177_v26, %v177_v26 }
 0x1b9   :  { %387 = vmatmul.mubr.msk.bf16.vlgmr.msra.gmra.mrb[4].mxu0 %vm133_vm2, %v178_v28 }
 0x28c   :  { %v255_v30 = vpop.f32.mrb[4].mxu0 }
 0x28d   :  { %v256_v31 = vadd.f32 %v340_v29, %v255_v30  ;;  %v388_v32 = vpop.f32.mrb[5].mxu0 }
 0x28e   :  { %v258_v33 = vpop.f32.mrb[6].mxu0 }
 0x28f   :  { %v264_v34 = vand.u32 2147483647, %v256_v31  ;;  %v389_v35 = vpop.f32.mrb[7].mxu0  ;;  %v263_v46 = vmax.f32 %v256_v31, 0.0 }
 0x291   :  { %v265_v36 = vsub.f32 0.0, %v264_v34 }
 0x293   :  { %v266_v37 = vmul.f32 1.442695, %v265_v36 }
 0x295   :  { %404 = vpow2.f32 %v266_v37 }
 0x29f   :  { %v405_v38 = vpop.eup %404 }
 0x2a0   :  { %v268_v39 = vadd.f32 1.0, %v405_v38  ;;  %v271_v40 = vmul.f32 -0.5, %v405_v38  ;;  %v274_v42 = vand.u32 2147483647, %v405_v38 }
 0x2a2   :  { %406 = vlog2.f32 %v268_v39  ;;  %v272_v41 = vadd.f32 1.0, %v271_v40  ;;  %vm275_vm3 = vcmp.lt.f32.partialorder %v274_v42, 0.0004427343 }
 0x2a4   :  { %v273_v45 = vmul.f32 %v405_v38, %v272_v41 }
 0x2ac   :  { %v407_v43 = vpop.eup %406 }
 0x2ad   :  { %v270_v44 = vmul.f32 0.6931472, %v407_v43 }
 0x2af   :  { %v276_v47 = vsel %vm275_vm3, %v273_v45, %v270_v44 }
 0x2b0   :  { %v277_v48 = vadd.f32 %v276_v47, %v263_v46 }
 0x2b2   :  { %v278_v50 = vadd.f32 0.001, %v277_v48 }
 0x2b4   :  { %v284_v51 = vmul.f32 %v282_v49, %v278_v50  ;;  %408 = vrcp.f32 %v278_v50 }
 0x2b5   :  { %410 = vlog2.f32 %v278_v50 }
 0x2b6   :  { %286 = vrot.lane.b32.xlu0 %v284_v51, %s441_s4  ;;  %412 = vtanh.f32 %v256_v31 }
 0x2be   :  { %v409_v52 = vpop.eup %408 }
 0x2bf   :  { %v411_v53 = vpop.eup %410  ;;  %295 = vrot.lane.b32.xlu1 %v409_v52, %s441_s4 }
 0x2c0   :  { %v302_v54 = vmul.f32 0.6931472, %v411_v53  ;;  %v413_v55 = vpop.eup %412 }
 0x2c1   :  { %v262_v56 = vmul.f32 2.0, %v413_v55 }
 0x2c3   :  { %304 = vrot.lane.b32.xlu1 %v302_v54, %s441_s4 }
 0x328   :  { %v287_v57 = vpop.permute.xlu0 %286 }
 0x329   :  { %v289_v58 = vadd.f32 %v287_v57, %v262_v56 }
 0x32b   :  { %v346_v59 = vclamps-f32 %v289_v58, 2.0 }
 0x32d   :  { %v293_v60 = vsub.f32 %v346_v59, %v262_v56 }
 0x331   :  { %v296_v61 = vpop.permute.xlu1 %295 }
 0x332   :  { %v298_v62 = vmul.f32 %v296_v61, %v293_v60 }
 0x334   :  { %v299_v63 = vmul.f32 -0.5, %v298_v62 }
 0x335   :  { %v305_v1 = vpop.permute.xlu1 %304 }
 0x336   :  { %v300_v0 = vmul.f32 %v299_v63, %v298_v62 }
 0x338   :  { %v307_v2 = vsub.f32 %v300_v0, %v305_v1 }
 0x33a   :  { %v347_v3 = vadd.f32 -0.9189385, %v307_v2 }
 0x33c   :  { %310 = vrot.lane.b32.xlu0 %v347_v3, %s440_s25 }
 0x3ae   :  { %v311_v4 = vpop.permute.xlu0 %310 }
 0x3af   :  { %v314_v5 = vsel %vm313_vm4, %v346_v59, %v311_v4 }
 0x3b0   :  { %316 = vst.msk [vmem:[#allocation2] sm:$0xff] %vm315_vm5, %v314_v5 }
 0x3b1   :  { %425 = shalt.err (!%p422_p4)
}
 0x3b2   :  { %s426_s10 = scalar_lea.hbm %s554_s8, 128 }
 0x3b3   :  { %p427_p5 = scmp.ne.s32.totalorder %s554_s8, %s426_s10  ;;  %p430_p6 = scmp.lt.u32.totalorder %s426_s10, %s554_s8 }
 0x3b5   :  { %p432_p7 = pnand %p430_p6, %p427_p5 }
 0x3b7   :  { %435 = shalt.err (!%p432_p7)
}
 0x3b8   :  { %326 = dma.vmem_to_hbm [thread:$0]  %s324_s7, 128, %s554_s8, [#allocation3]  }
 0x3b9   :  { %436 = dma.done.wait [#allocation3], 128  }
 0x3ba   :  { %437 = vsyncadd [#allocation3], 4294967168 }
 0x3bb   :  { %330 = vsyncpa [#allocation3], 1 }

</bundles_post_ra>
